<compile_context>
chip_gen: v7x
topology: tpu7x:2x2x1
jax: 0.10.0
libtpu: 0.0.40
codegen_flags: <defaults>
</compile_context>

<pallas_src>
import jax
import jax.numpy as jnp
from jax.experimental import pallas as pl
from jax.experimental.pallas import tpu as pltpu

# "env" constants used by normalize_states
ENV_W0 = 2.0
ENV_S0 = 1.5


def _round_up(x: int, m: int) -> int:
    return ((x + m - 1) // m) * m


def make_cdf_kernel(n_extra: int, w0: float, s0: float):
    """Pallas kernel for a CDFANN with `n_extra` = n_layers - 4 PosLinear hidden
    layers (static).  Activations are (features, TB): batch on lanes."""

    def kernel(*refs):
        (xb, w1, b1, w2, b2,
         w3x, w3a, b3,
         w4, b4,
         w5x, w5z, b5) = refs[:13]
        extra = refs[13:13 + 2 * n_extra]
        wout = refs[13 + 2 * n_extra]           # (H, 1) pre-squared, pre-transposed
        bout = refs[14 + 2 * n_extra]           # (1, 1)
        o_ref = refs[-1]

        H, S = w1.shape
        A = w3a.shape[1]

        # One tanh per activation instead of exp + reciprocal (EUP relief).
        def sigmoid_t(v):
            return 0.5 * (1.0 + jnp.tanh(0.5 * v))

        def silu_t(v):
            return v * sigmoid_t(v)

        def dense(w_ref, x, b_ref):
            # (out, in) @ (in, TB) + (out, 1)  ->  (out, TB), lane-dense
            return jnp.dot(w_ref[...], x,
                           preferred_element_type=jnp.float32) + b_ref[...]

        # --- h1: normalize_states fused into a K=S broadcast-FMA (VPU only) ---
        pre1 = None
        for k in range(S):
            row = xb[1 + k:2 + k, :]             # (1, TB) state feature k
            if k == 0:
                r = row
            elif k == 1:
                r = row / w0 - 1.0
            else:
                r = jnp.log(row / s0)
            term = w1[:, k:k + 1] * r            # (H, 1) * (1, TB) -> (H, TB)
            pre1 = term if pre1 is None else pre1 + term
        x = silu_t(pre1 + b1[...])

        # --- h2 ---
        x = silu_t(dense(w2, x, b2))

        # --- h3(cat(x, action)): x part on MXU, K=A action part as VPU FMA ---
        pre3 = jnp.dot(w3x[...], x, preferred_element_type=jnp.float32) + b3[...]
        for k in range(A):
            pre3 = pre3 + w3a[:, k:k + 1] * xb[1 + S + k:2 + S + k, :]
        x = silu_t(pre3)

        # --- h4 ---
        x = silu_t(dense(w4, x, b4))

        # --- h5 (PosLinear, weights pre-squared) over cat(x, z):
        #     z term is a rank-1 broadcast multiply (VPU), no K=1 MXU pass ---
        z_row = xb[0:1, :]
        x = jnp.tanh(jnp.dot(w5x[...], x, preferred_element_type=jnp.float32)
                     + w5z[...] * z_row + b5[...])

        # --- extra PosLinear hidden layers (weights pre-squared) ---
        for i in range(n_extra):
            x = jnp.tanh(dense(extra[2 * i], x, extra[2 * i + 1]))

        # --- output PosLinear + sigmoid: M=1 layer done on VPU + XLU reduce ---
        pre_out = jnp.sum(wout[...] * x, axis=0, keepdims=True) + bout[...]
        o_ref[...] = sigmoid_t(pre_out).astype(o_ref.dtype)

    return kernel


def cdfann_forward(z, state, action, params, *, w0=ENV_W0, s0=ENV_S0,
                   block_b=4096):
    """Glue: pack (z | state | action) into a single (F_pad, B_pad) slab with
    batch on lanes, pre-square PosLinear weights, and call the gridded kernel.

    `params` holds torch-layout weights: weight (out, in), bias (out,).
    """
    B = z.shape[0]
    S = state.shape[1]
    A = action.shape[1]
    H = params["h1_w"].shape[0]
    n_extra = len(params["hn_w"])

    # --- batch tile sizing -------------------------------------------------
    B128 = _round_up(B, 128)
    # Large tiles amortize the ~0.35us/step pipeline overhead; 8192 cap keeps
    # the double-buffered working set inside v7x's 64 MiB physical VMEM.
    TB = min(_round_up(block_b, 128), B128, 8192)
    # Prefer >= 2 grid steps when the batch allows, so the "parallel" batch
    # axis actually feeds both TensorCores on v7x.
    if B128 >= 256 and B128 // TB < 2:
        TB = max(128, (B128 // 2) // 128 * 128)
    B_pad = _round_up(B, TB)
    grid = (B_pad // TB,)

    # --- pack batch operands: rows = [z | state | action | pad] -------------
    F = 1 + S + A
    F_pad = _round_up(F, 8)
    xbT = jnp.concatenate([jnp.asarray(z, jnp.float32),
                           jnp.asarray(state, jnp.float32),
                           jnp.asarray(action, jnp.float32)], axis=-1).T  # (F, B)
    # Pad everything with 1.0: keeps log() on padded batch columns finite;
    # padded rows/columns are never read back into the real output.
    xbT = jnp.pad(xbT, ((0, F_pad - F), (0, B_pad - B)), constant_values=1.0)

    # --- weights (torch (out, in) layout), PosLinear pre-squared ------------
    def wmat(p):
        return jnp.asarray(p, jnp.float32)

    def bcol(p):
        return jnp.asarray(p, jnp.float32).reshape(-1, 1)

    w3 = wmat(params["h3_w"])              # (H, H + A), input order = [x | action]
    w5 = wmat(params["h5_w"])              # (H, H + 1), input order = [x | z]

    weight_inputs = [
        wmat(params["h1_w"]), bcol(params["h1_b"]),
        wmat(params["h2_w"]), bcol(params["h2_b"]),
        w3[:, :H], w3[:, H:], bcol(params["h3_b"]),
        wmat(params["h4_w"]), bcol(params["h4_b"]),
        (w5[:, :H]) ** 2, (w5[:, H:]) ** 2, bcol(params["h5_b"]),
    ]
    for wn, bn in zip(params["hn_w"], params["hn_b"]):
        weight_inputs += [wmat(wn) ** 2, bcol(bn)]
    # output layer passed as a (H, 1) column (consumed on VPU/XLU, not MXU)
    weight_inputs += [(wmat(params["hout_w"]) ** 2).T, bcol(params["hout_b"])]

    batch_spec = pl.BlockSpec((F_pad, TB), lambda i: (0, i))
    weight_specs = [pl.BlockSpec(w.shape, lambda i: (0, 0))
                    for w in weight_inputs]            # resident across the grid

    # --- advisory cost estimate ---------------------------------------------
    flops = 2 * B_pad * H * (S + A + 2 + H * (4 + n_extra))
    transcendentals = B_pad * (H * (5 + n_extra) + 1)
    bytes_accessed = (F_pad + 1) * B_pad * 4 + 4 * sum(int(w.size) for w in weight_inputs)
    cost = pl.CostEstimate(flops=flops, transcendentals=transcendentals,
                           bytes_accessed=bytes_accessed)

    kernel = make_cdf_kernel(n_extra, w0, s0)
    out_T = pl.pallas_call(
        kernel,
        out_shape=jax.ShapeDtypeStruct((1, B_pad), jnp.float32),
        grid=grid,
        in_specs=[batch_spec] + weight_specs,
        out_specs=pl.BlockSpec((1, TB), lambda i: (0, i)),
        compiler_params=pltpu.CompilerParams(
            dimension_semantics=("parallel",),
            vmem_limit_bytes=48 << 20),
        cost_estimate=cost,
    )(xbT, *weight_inputs)

    return out_T[:, :B].T              # back to module layout (B, 1)


def cdfann_reference(z, state, action, params, *, w0=ENV_W0, s0=ENV_S0):
    """Pure-JAX reference (mirrors the PyTorch forward) for correctness check."""
    s = jnp.asarray(state, jnp.float32)
    s_norm = jnp.concatenate(
        [s[:, 0:1], s[:, 1:2] / w0 - 1.0, jnp.log(s[:, 2:] / s0)], axis=-1)

    def lin(x, w, b):
        return x @ jnp.asarray(w, jnp.float32).T + jnp.asarray(b, jnp.float32)

    x = jax.nn.silu(lin(s_norm, params["h1_w"], params["h1_b"]))
    x = jax.nn.silu(lin(x, params["h2_w"], params["h2_b"]))
    x = jax.nn.silu(lin(jnp.concatenate([x, action], axis=-1),
                        params["h3_w"], params["h3_b"]))
    x = jax.nn.silu(lin(x, params["h4_w"], params["h4_b"]))
    x = jnp.tanh(lin(jnp.concatenate([x, z], axis=-1),
                     jnp.asarray(params["h5_w"]) ** 2, params["h5_b"]))
    for wn, bn in zip(params["hn_w"], params["hn_b"]):
        x = jnp.tanh(lin(x, jnp.asarray(wn) ** 2, bn))
    return jax.nn.sigmoid(lin(x, jnp.asarray(params["hout_w"]) ** 2,
                              params["hout_b"]))


def init_params(key, s_size, a_size, hidden, n_layers):
    """Deterministic synthetic init (shapes match the PyTorch module)."""
    def xavier(key, out_f, in_f):
        bound = (6.0 / (in_f + out_f)) ** 0.5
        return jax.random.uniform(key, (out_f, in_f), jnp.float32,
                                  minval=-bound, maxval=bound)

    keys = jax.random.split(key, 16 + 2 * (n_layers - 4))
    ki = iter(range(len(keys)))
    params = {}
    # nn.Linear layers: xavier weights, zero bias (initialize_weights)
    params["h1_w"] = xavier(keys[next(ki)], hidden, s_size)
    params["h1_b"] = jnp.zeros((hidden,), jnp.float32)
    params["h2_w"] = xavier(keys[next(ki)], hidden, hidden)
    params["h2_b"] = jnp.zeros((hidden,), jnp.float32)
    params["h3_w"] = xavier(keys[next(ki)], hidden, a_size + hidden)
    params["h3_b"] = jnp.zeros((hidden,), jnp.float32)
    params["h4_w"] = xavier(keys[next(ki)], hidden, hidden)
    params["h4_b"] = jnp.zeros((hidden,), jnp.float32)

    # PosLinear layers: kaiming-ish uniform weights and small uniform bias
    def poslin(kw, kb, out_f, in_f):
        bound = 1.0 / (in_f ** 0.5)
        w = jax.random.uniform(kw, (out_f, in_f), jnp.float32,
                               minval=-bound, maxval=bound)
        b = jax.random.uniform(kb, (out_f,), jnp.float32,
                               minval=-bound, maxval=bound)
        return w, b

    params["h5_w"], params["h5_b"] = poslin(keys[next(ki)], keys[next(ki)],
                                            hidden, 1 + hidden)
    params["hn_w"], params["hn_b"] = [], []
    for _ in range(n_layers - 4):
        w, b = poslin(keys[next(ki)], keys[next(ki)], hidden, hidden)
        params["hn_w"].append(w)
        params["hn_b"].append(b)
    params["hout_w"], params["hout_b"] = poslin(keys[next(ki)], keys[next(ki)],
                                                1, hidden)
    return params


if __name__ == "__main__":
    # small shapes consistent with the module
    S_SIZE, A_SIZE, HIDDEN, N_LAYERS = 4, 2, 32, 5

    key = jax.random.PRNGKey(0)
    k_par, k_z, k_s, k_a = jax.random.split(key, 4)
    params = init_params(k_par, S_SIZE, A_SIZE, HIDDEN, N_LAYERS)

    for B in (8, 300):        # single-step grid, and multi-step grid + padding
        kz, ks, ka = jax.random.split(jax.random.fold_in(key, B), 3)
        z = jax.random.uniform(kz, (B, 1), jnp.float32)
        # state kept strictly positive so log-normalization of cols 2: is defined
        state = jax.random.uniform(ks, (B, S_SIZE), jnp.float32,
                                   minval=0.5, maxval=2.0)
        action = jax.random.normal(ka, (B, A_SIZE), jnp.float32)

        out = cdfann_forward(z, state, action, params)
        out = jax.block_until_ready(out)

        ref = cdfann_reference(z, state, action, params)
        assert out.shape == (B, 1)
        # tanh-form sigmoid/silu and VPU-FMA small-K layers are mathematically
        # identical but not bit-identical to the reference -> 1e-4 tolerance.
        assert jnp.allclose(out, ref, atol=1e-4, rtol=1e-4), (out, ref)

    print("KERNEL_OK")
</pallas_src>

<mosaic_0001>
module attributes {stable_mosaic.version = 11 : i64} {
  func.func @kernel(%arg0: i32, %arg1: memref<8x128xf32, #tpu.memory_space<vmem>>, %arg2: memref<32x4xf32, #tpu.memory_space<vmem>>, %arg3: memref<32x1xf32, #tpu.memory_space<vmem>>, %arg4: memref<32x32xf32, #tpu.memory_space<vmem>>, %arg5: memref<32x1xf32, #tpu.memory_space<vmem>>, %arg6: memref<32x32xf32, #tpu.memory_space<vmem>>, %arg7: memref<32x2xf32, #tpu.memory_space<vmem>>, %arg8: memref<32x1xf32, #tpu.memory_space<vmem>>, %arg9: memref<32x32xf32, #tpu.memory_space<vmem>>, %arg10: memref<32x1xf32, #tpu.memory_space<vmem>>, %arg11: memref<32x32xf32, #tpu.memory_space<vmem>>, %arg12: memref<32x1xf32, #tpu.memory_space<vmem>>, %arg13: memref<32x1xf32, #tpu.memory_space<vmem>>, %arg14: memref<32x32xf32, #tpu.memory_space<vmem>>, %arg15: memref<32x1xf32, #tpu.memory_space<vmem>>, %arg16: memref<32x1xf32, #tpu.memory_space<vmem>>, %arg17: memref<1x1xf32, #tpu.memory_space<vmem>>, %arg18: memref<1x128xf32, #tpu.memory_space<vmem>>) attributes {dimension_semantics = [#tpu.dimension_semantics<parallel>], iteration_bounds = array<i64: 1>, scalar_prefetch = 0 : i64, scratch_operands = 0 : i64, tpu.core_type = #tpu.core_type<tc>, window_params = [{transform_indices = @transform_0, window_bounds = array<i64: 8, 128>}, {pipeline_mode = #tpu.pipeline_mode<synchronous>, transform_indices = @transform_1, window_bounds = array<i64: 32, 4>}, {pipeline_mode = #tpu.pipeline_mode<synchronous>, transform_indices = @transform_2, window_bounds = array<i64: 32, 1>}, {pipeline_mode = #tpu.pipeline_mode<synchronous>, transform_indices = @transform_3, window_bounds = array<i64: 32, 32>}, {pipeline_mode = #tpu.pipeline_mode<synchronous>, transform_indices = @transform_4, window_bounds = array<i64: 32, 1>}, {pipeline_mode = #tpu.pipeline_mode<synchronous>, transform_indices = @transform_5, window_bounds = array<i64: 32, 32>}, {pipeline_mode = #tpu.pipeline_mode<synchronous>, transform_indices = @transform_6, window_bounds = array<i64: 32, 2>}, {pipeline_mode = #tpu.pipeline_mode<synchronous>, transform_indices = @transform_7, window_bounds = array<i64: 32, 1>}, {pipeline_mode = #tpu.pipeline_mode<synchronous>, transform_indices = @transform_8, window_bounds = array<i64: 32, 32>}, {pipeline_mode = #tpu.pipeline_mode<synchronous>, transform_indices = @transform_9, window_bounds = array<i64: 32, 1>}, {pipeline_mode = #tpu.pipeline_mode<synchronous>, transform_indices = @transform_10, window_bounds = array<i64: 32, 32>}, {pipeline_mode = #tpu.pipeline_mode<synchronous>, transform_indices = @transform_11, window_bounds = array<i64: 32, 1>}, {pipeline_mode = #tpu.pipeline_mode<synchronous>, transform_indices = @transform_12, window_bounds = array<i64: 32, 1>}, {pipeline_mode = #tpu.pipeline_mode<synchronous>, transform_indices = @transform_13, window_bounds = array<i64: 32, 32>}, {pipeline_mode = #tpu.pipeline_mode<synchronous>, transform_indices = @transform_14, window_bounds = array<i64: 32, 1>}, {pipeline_mode = #tpu.pipeline_mode<synchronous>, transform_indices = @transform_15, window_bounds = array<i64: 32, 1>}, {pipeline_mode = #tpu.pipeline_mode<synchronous>, transform_indices = @transform_16, window_bounds = array<i64: 1, 1>}, {transform_indices = @transform_17, window_bounds = array<i64: 1, 128>}]} {
    %c1 = arith.constant 1 : index
    %c0 = arith.constant 0 : index
    %0 = vector.load %arg1[%c1, %c0] : memref<8x128xf32, #tpu.memory_space<vmem>>, vector<1x128xf32>
    %c0_0 = arith.constant 0 : index
    %c0_1 = arith.constant 0 : index
    %1 = vector.load %arg2[%c0_0, %c0_1] : memref<32x4xf32, #tpu.memory_space<vmem>>, vector<32x1xf32>
    %2 = vector.broadcast %1 : vector<32x1xf32> to vector<32x128xf32>
    %3 = vector.broadcast %0 : vector<1x128xf32> to vector<32x128xf32>
    %4 = arith.mulf %2, %3 : vector<32x128xf32>
    %c2 = arith.constant 2 : index
    %c0_2 = arith.constant 0 : index
    %5 = vector.load %arg1[%c2, %c0_2] : memref<8x128xf32, #tpu.memory_space<vmem>>, vector<1x128xf32>
    %cst = arith.constant 2.000000e+00 : f32
    %6 = vector.broadcast %cst : f32 to vector<1x128xf32>
    %7 = arith.divf %5, %6 : vector<1x128xf32>
    %cst_3 = arith.constant 1.000000e+00 : f32
    %8 = vector.broadcast %cst_3 : f32 to vector<1x128xf32>
    %9 = arith.subf %7, %8 : vector<1x128xf32>
    %c0_4 = arith.constant 0 : index
    %c1_5 = arith.constant 1 : index
    %10 = vector.load %arg2[%c0_4, %c1_5] : memref<32x4xf32, #tpu.memory_space<vmem>>, vector<32x1xf32>
    %11 = vector.broadcast %10 : vector<32x1xf32> to vector<32x128xf32>
    %12 = vector.broadcast %9 : vector<1x128xf32> to vector<32x128xf32>
    %13 = arith.mulf %11, %12 : vector<32x128xf32>
    %14 = arith.addf %4, %13 : vector<32x128xf32>
    %c3 = arith.constant 3 : index
    %c0_6 = arith.constant 0 : index
    %15 = vector.load %arg1[%c3, %c0_6] : memref<8x128xf32, #tpu.memory_space<vmem>>, vector<1x128xf32>
    %cst_7 = arith.constant 1.500000e+00 : f32
    %16 = vector.broadcast %cst_7 : f32 to vector<1x128xf32>
    %17 = arith.divf %15, %16 : vector<1x128xf32>
    %18 = math.log %17 : vector<1x128xf32>
    %c0_8 = arith.constant 0 : index
    %c2_9 = arith.constant 2 : index
    %19 = vector.load %arg2[%c0_8, %c2_9] : memref<32x4xf32, #tpu.memory_space<vmem>>, vector<32x1xf32>
    %20 = vector.broadcast %19 : vector<32x1xf32> to vector<32x128xf32>
    %21 = vector.broadcast %18 : vector<1x128xf32> to vector<32x128xf32>
    %22 = arith.mulf %20, %21 : vector<32x128xf32>
    %23 = arith.addf %14, %22 : vector<32x128xf32>
    %c4 = arith.constant 4 : index
    %c0_10 = arith.constant 0 : index
    %24 = vector.load %arg1[%c4, %c0_10] : memref<8x128xf32, #tpu.memory_space<vmem>>, vector<1x128xf32>
    %cst_11 = arith.constant 1.500000e+00 : f32
    %25 = vector.broadcast %cst_11 : f32 to vector<1x128xf32>
    %26 = arith.divf %24, %25 : vector<1x128xf32>
    %27 = math.log %26 : vector<1x128xf32>
    %c0_12 = arith.constant 0 : index
    %c3_13 = arith.constant 3 : index
    %28 = vector.load %arg2[%c0_12, %c3_13] : memref<32x4xf32, #tpu.memory_space<vmem>>, vector<32x1xf32>
    %29 = vector.broadcast %28 : vector<32x1xf32> to vector<32x128xf32>
    %30 = vector.broadcast %27 : vector<1x128xf32> to vector<32x128xf32>
    %31 = arith.mulf %29, %30 : vector<32x128xf32>
    %32 = arith.addf %23, %31 : vector<32x128xf32>
    %c0_14 = arith.constant 0 : index
    %c0_15 = arith.constant 0 : index
    %33 = vector.load %arg3[%c0_14, %c0_15] : memref<32x1xf32, #tpu.memory_space<vmem>>, vector<32x1xf32>
    %34 = vector.broadcast %33 : vector<32x1xf32> to vector<32x128xf32>
    %35 = arith.addf %32, %34 : vector<32x128xf32>
    %cst_16 = arith.constant 5.000000e-01 : f32
    %36 = vector.broadcast %cst_16 : f32 to vector<32x128xf32>
    %37 = arith.mulf %36, %35 : vector<32x128xf32>
    %38 = math.tanh %37 : vector<32x128xf32>
    %cst_17 = arith.constant 1.000000e+00 : f32
    %39 = vector.broadcast %cst_17 : f32 to vector<32x128xf32>
    %40 = arith.addf %39, %38 : vector<32x128xf32>
    %cst_18 = arith.constant 5.000000e-01 : f32
    %41 = vector.broadcast %cst_18 : f32 to vector<32x128xf32>
    %42 = arith.mulf %41, %40 : vector<32x128xf32>
    %43 = arith.mulf %35, %42 : vector<32x128xf32>
    %c0_19 = arith.constant 0 : index
    %c0_20 = arith.constant 0 : index
    %44 = vector.load %arg4[%c0_19, %c0_20] : memref<32x32xf32, #tpu.memory_space<vmem>>, vector<32x32xf32>
    %cst_21 = arith.constant dense<0.000000e+00> : vector<32x128xf32>
    %45 = tpu.matmul %44, %43, %cst_21 {dimension_numbers = #tpu.dot_dimension_numbers<[1], [0], [0], [1], [0, 0, 1, 1], [], []>} : vector<32x32xf32>, vector<32x128xf32>, vector<32x128xf32> -> vector<32x128xf32>
    %c0_22 = arith.constant 0 : index
    %c0_23 = arith.constant 0 : index
    %46 = vector.load %arg5[%c0_22, %c0_23] : memref<32x1xf32, #tpu.memory_space<vmem>>, vector<32x1xf32>
    %47 = vector.broadcast %46 : vector<32x1xf32> to vector<32x128xf32>
    %48 = arith.addf %45, %47 : vector<32x128xf32>
    %cst_24 = arith.constant 5.000000e-01 : f32
    %49 = vector.broadcast %cst_24 : f32 to vector<32x128xf32>
    %50 = arith.mulf %49, %48 : vector<32x128xf32>
    %51 = math.tanh %50 : vector<32x128xf32>
    %cst_25 = arith.constant 1.000000e+00 : f32
    %52 = vector.broadcast %cst_25 : f32 to vector<32x128xf32>
    %53 = arith.addf %52, %51 : vector<32x128xf32>
    %cst_26 = arith.constant 5.000000e-01 : f32
    %54 = vector.broadcast %cst_26 : f32 to vector<32x128xf32>
    %55 = arith.mulf %54, %53 : vector<32x128xf32>
    %56 = arith.mulf %48, %55 : vector<32x128xf32>
    %c0_27 = arith.constant 0 : index
    %c0_28 = arith.constant 0 : index
    %57 = vector.load %arg6[%c0_27, %c0_28] : memref<32x32xf32, #tpu.memory_space<vmem>>, vector<32x32xf32>
    %cst_29 = arith.constant dense<0.000000e+00> : vector<32x128xf32>
    %58 = tpu.matmul %57, %56, %cst_29 {dimension_numbers = #tpu.dot_dimension_numbers<[1], [0], [0], [1], [0, 0, 1, 1], [], []>} : vector<32x32xf32>, vector<32x128xf32>, vector<32x128xf32> -> vector<32x128xf32>
    %c0_30 = arith.constant 0 : index
    %c0_31 = arith.constant 0 : index
    %59 = vector.load %arg8[%c0_30, %c0_31] : memref<32x1xf32, #tpu.memory_space<vmem>>, vector<32x1xf32>
    %60 = vector.broadcast %59 : vector<32x1xf32> to vector<32x128xf32>
    %61 = arith.addf %58, %60 : vector<32x128xf32>
    %c0_32 = arith.constant 0 : index
    %c0_33 = arith.constant 0 : index
    %62 = vector.load %arg7[%c0_32, %c0_33] : memref<32x2xf32, #tpu.memory_space<vmem>>, vector<32x1xf32>
    %c5 = arith.constant 5 : index
    %c0_34 = arith.constant 0 : index
    %63 = vector.load %arg1[%c5, %c0_34] : memref<8x128xf32, #tpu.memory_space<vmem>>, vector<1x128xf32>
    %64 = vector.broadcast %62 : vector<32x1xf32> to vector<32x128xf32>
    %65 = vector.broadcast %63 : vector<1x128xf32> to vector<32x128xf32>
    %66 = arith.mulf %64, %65 : vector<32x128xf32>
    %67 = arith.addf %61, %66 : vector<32x128xf32>
    %c0_35 = arith.constant 0 : index
    %c1_36 = arith.constant 1 : index
    %68 = vector.load %arg7[%c0_35, %c1_36] : memref<32x2xf32, #tpu.memory_space<vmem>>, vector<32x1xf32>
    %c6 = arith.constant 6 : index
    %c0_37 = arith.constant 0 : index
    %69 = vector.load %arg1[%c6, %c0_37] : memref<8x128xf32, #tpu.memory_space<vmem>>, vector<1x128xf32>
    %70 = vector.broadcast %68 : vector<32x1xf32> to vector<32x128xf32>
    %71 = vector.broadcast %69 : vector<1x128xf32> to vector<32x128xf32>
    %72 = arith.mulf %70, %71 : vector<32x128xf32>
    %73 = arith.addf %67, %72 : vector<32x128xf32>
    %cst_38 = arith.constant 5.000000e-01 : f32
    %74 = vector.broadcast %cst_38 : f32 to vector<32x128xf32>
    %75 = arith.mulf %74, %73 : vector<32x128xf32>
    %76 = math.tanh %75 : vector<32x128xf32>
    %cst_39 = arith.constant 1.000000e+00 : f32
    %77 = vector.broadcast %cst_39 : f32 to vector<32x128xf32>
    %78 = arith.addf %77, %76 : vector<32x128xf32>
    %cst_40 = arith.constant 5.000000e-01 : f32
    %79 = vector.broadcast %cst_40 : f32 to vector<32x128xf32>
    %80 = arith.mulf %79, %78 : vector<32x128xf32>
    %81 = arith.mulf %73, %80 : vector<32x128xf32>
    %c0_41 = arith.constant 0 : index
    %c0_42 = arith.constant 0 : index
    %82 = vector.load %arg9[%c0_41, %c0_42] : memref<32x32xf32, #tpu.memory_space<vmem>>, vector<32x32xf32>
    %cst_43 = arith.constant dense<0.000000e+00> : vector<32x128xf32>
    %83 = tpu.matmul %82, %81, %cst_43 {dimension_numbers = #tpu.dot_dimension_numbers<[1], [0], [0], [1], [0, 0, 1, 1], [], []>} : vector<32x32xf32>, vector<32x128xf32>, vector<32x128xf32> -> vector<32x128xf32>
    %c0_44 = arith.constant 0 : index
    %c0_45 = arith.constant 0 : index
    %84 = vector.load %arg10[%c0_44, %c0_45] : memref<32x1xf32, #tpu.memory_space<vmem>>, vector<32x1xf32>
    %85 = vector.broadcast %84 : vector<32x1xf32> to vector<32x128xf32>
    %86 = arith.addf %83, %85 : vector<32x128xf32>
    %cst_46 = arith.constant 5.000000e-01 : f32
    %87 = vector.broadcast %cst_46 : f32 to vector<32x128xf32>
    %88 = arith.mulf %87, %86 : vector<32x128xf32>
    %89 = math.tanh %88 : vector<32x128xf32>
    %cst_47 = arith.constant 1.000000e+00 : f32
    %90 = vector.broadcast %cst_47 : f32 to vector<32x128xf32>
    %91 = arith.addf %90, %89 : vector<32x128xf32>
    %cst_48 = arith.constant 5.000000e-01 : f32
    %92 = vector.broadcast %cst_48 : f32 to vector<32x128xf32>
    %93 = arith.mulf %92, %91 : vector<32x128xf32>
    %94 = arith.mulf %86, %93 : vector<32x128xf32>
    %c0_49 = arith.constant 0 : index
    %c0_50 = arith.constant 0 : index
    %95 = vector.load %arg1[%c0_49, %c0_50] : memref<8x128xf32, #tpu.memory_space<vmem>>, vector<1x128xf32>
    %c0_51 = arith.constant 0 : index
    %c0_52 = arith.constant 0 : index
    %96 = vector.load %arg11[%c0_51, %c0_52] : memref<32x32xf32, #tpu.memory_space<vmem>>, vector<32x32xf32>
    %cst_53 = arith.constant dense<0.000000e+00> : vector<32x128xf32>
    %97 = tpu.matmul %96, %94, %cst_53 {dimension_numbers = #tpu.dot_dimension_numbers<[1], [0], [0], [1], [0, 0, 1, 1], [], []>} : vector<32x32xf32>, vector<32x128xf32>, vector<32x128xf32> -> vector<32x128xf32>
    %c0_54 = arith.constant 0 : index
    %c0_55 = arith.constant 0 : index
    %98 = vector.load %arg12[%c0_54, %c0_55] : memref<32x1xf32, #tpu.memory_space<vmem>>, vector<32x1xf32>
    %99 = vector.broadcast %98 : vector<32x1xf32> to vector<32x128xf32>
    %100 = vector.broadcast %95 : vector<1x128xf32> to vector<32x128xf32>
    %101 = arith.mulf %99, %100 : vector<32x128xf32>
    %102 = arith.addf %97, %101 : vector<32x128xf32>
    %c0_56 = arith.constant 0 : index
    %c0_57 = arith.constant 0 : index
    %103 = vector.load %arg13[%c0_56, %c0_57] : memref<32x1xf32, #tpu.memory_space<vmem>>, vector<32x1xf32>
    %104 = vector.broadcast %103 : vector<32x1xf32> to vector<32x128xf32>
    %105 = arith.addf %102, %104 : vector<32x128xf32>
    %106 = math.tanh %105 : vector<32x128xf32>
    %c0_58 = arith.constant 0 : index
    %c0_59 = arith.constant 0 : index
    %107 = vector.load %arg14[%c0_58, %c0_59] : memref<32x32xf32, #tpu.memory_space<vmem>>, vector<32x32xf32>
    %cst_60 = arith.constant dense<0.000000e+00> : vector<32x128xf32>
    %108 = tpu.matmul %107, %106, %cst_60 {dimension_numbers = #tpu.dot_dimension_numbers<[1], [0], [0], [1], [0, 0, 1, 1], [], []>} : vector<32x32xf32>, vector<32x128xf32>, vector<32x128xf32> -> vector<32x128xf32>
    %c0_61 = arith.constant 0 : index
    %c0_62 = arith.constant 0 : index
    %109 = vector.load %arg15[%c0_61, %c0_62] : memref<32x1xf32, #tpu.memory_space<vmem>>, vector<32x1xf32>
    %110 = vector.broadcast %109 : vector<32x1xf32> to vector<32x128xf32>
    %111 = arith.addf %108, %110 : vector<32x128xf32>
    %112 = math.tanh %111 : vector<32x128xf32>
    %c0_63 = arith.constant 0 : index
    %c0_64 = arith.constant 0 : index
    %113 = vector.load %arg16[%c0_63, %c0_64] : memref<32x1xf32, #tpu.memory_space<vmem>>, vector<32x1xf32>
    %114 = vector.broadcast %113 : vector<32x1xf32> to vector<32x128xf32>
    %115 = arith.mulf %114, %112 : vector<32x128xf32>
    %cst_65 = arith.constant dense<0.000000e+00> : vector<128xf32>
    %116 = vector.multi_reduction <add>, %115, %cst_65 [0] : vector<32x128xf32> to vector<128xf32>
    %117 = vector.shape_cast %116 : vector<128xf32> to vector<1x128xf32>
    %c0_66 = arith.constant 0 : index
    %c0_67 = arith.constant 0 : index
    %118 = vector.load %arg17[%c0_66, %c0_67] : memref<1x1xf32, #tpu.memory_space<vmem>>, vector<1x1xf32>
    %119 = vector.broadcast %118 : vector<1x1xf32> to vector<1x128xf32>
    %120 = arith.addf %117, %119 : vector<1x128xf32>
    %cst_68 = arith.constant 5.000000e-01 : f32
    %121 = vector.broadcast %cst_68 : f32 to vector<1x128xf32>
    %122 = arith.mulf %121, %120 : vector<1x128xf32>
    %123 = math.tanh %122 : vector<1x128xf32>
    %cst_69 = arith.constant 1.000000e+00 : f32
    %124 = vector.broadcast %cst_69 : f32 to vector<1x128xf32>
    %125 = arith.addf %124, %123 : vector<1x128xf32>
    %cst_70 = arith.constant 5.000000e-01 : f32
    %126 = vector.broadcast %cst_70 : f32 to vector<1x128xf32>
    %127 = arith.mulf %126, %125 : vector<1x128xf32>
    %c0_71 = arith.constant 0 : index
    %c0_72 = arith.constant 0 : index
    %128 = vector.load %arg18[%c0_71, %c0_72] : memref<1x128xf32, #tpu.memory_space<vmem>>, vector<1x128xf32>
    tpu.vector_store %arg18[%c0_71, %c0_72], %127 {strides = array<i32>} : memref<1x128xf32, #tpu.memory_space<vmem>>, vector<1x128xf32>,
    return
  }
  func.func @transform_0(%arg0: i32) -> (i32, i32) {
    %c0_i32 = arith.constant 0 : i32
    %c0_i32_0 = arith.constant 0 : i32
    return %c0_i32, %arg0 : i32, i32
  }
  func.func @transform_1(%arg0: i32) -> (i32, i32) {
    %c0_i32 = arith.constant 0 : i32
    %c0_i32_0 = arith.constant 0 : i32
    %c0_i32_1 = arith.constant 0 : i32
    return %c0_i32, %c0_i32_0 : i32, i32
  }
  func.func @transform_2(%arg0: i32) -> (i32, i32) {
    %c0_i32 = arith.constant 0 : i32
    %c0_i32_0 = arith.constant 0 : i32
    %c0_i32_1 = arith.constant 0 : i32
    return %c0_i32, %c0_i32_0 : i32, i32
  }
  func.func @transform_3(%arg0: i32) -> (i32, i32) {
    %c0_i32 = arith.constant 0 : i32
    %c0_i32_0 = arith.constant 0 : i32
    %c0_i32_1 = arith.constant 0 : i32
    return %c0_i32, %c0_i32_0 : i32, i32
  }
  func.func @transform_4(%arg0: i32) -> (i32, i32) {
    %c0_i32 = arith.constant 0 : i32
    %c0_i32_0 = arith.constant 0 : i32
    %c0_i32_1 = arith.constant 0 : i32
    return %c0_i32, %c0_i32_0 : i32, i32
  }
  func.func @transform_5(%arg0: i32) -> (i32, i32) {
    %c0_i32 = arith.constant 0 : i32
    %c0_i32_0 = arith.constant 0 : i32
    %c0_i32_1 = arith.constant 0 : i32
    return %c0_i32, %c0_i32_0 : i32, i32
  }
  func.func @transform_6(%arg0: i32) -> (i32, i32) {
    %c0_i32 = arith.constant 0 : i32
    %c0_i32_0 = arith.constant 0 : i32
    %c0_i32_1 = arith.constant 0 : i32
    return %c0_i32, %c0_i32_0 : i32, i32
  }
  func.func @transform_7(%arg0: i32) -> (i32, i32) {
    %c0_i32 = arith.constant 0 : i32
    %c0_i32_0 = arith.constant 0 : i32
    %c0_i32_1 = arith.constant 0 : i32
    return %c0_i32, %c0_i32_0 : i32, i32
  }
  func.func @transform_8(%arg0: i32) -> (i32, i32) {
    %c0_i32 = arith.constant 0 : i32
    %c0_i32_0 = arith.constant 0 : i32
    %c0_i32_1 = arith.constant 0 : i32
    return %c0_i32, %c0_i32_0 : i32, i32
  }
  func.func @transform_9(%arg0: i32) -> (i32, i32) {
    %c0_i32 = arith.constant 0 : i32
    %c0_i32_0 = arith.constant 0 : i32
    %c0_i32_1 = arith.constant 0 : i32
    return %c0_i32, %c0_i32_0 : i32, i32
  }
  func.func @transform_10(%arg0: i32) -> (i32, i32) {
    %c0_i32 = arith.constant 0 : i32
    %c0_i32_0 = arith.constant 0 : i32
    %c0_i32_1 = arith.constant 0 : i32
    return %c0_i32, %c0_i32_0 : i32, i32
  }
  func.func @transform_11(%arg0: i32) -> (i32, i32) {
    %c0_i32 = arith.constant 0 : i32
    %c0_i32_0 = arith.constant 0 : i32
    %c0_i32_1 = arith.constant 0 : i32
    return %c0_i32, %c0_i32_0 : i32, i32
  }
  func.func @transform_12(%arg0: i32) -> (i32, i32) {
    %c0_i32 = arith.constant 0 : i32
    %c0_i32_0 = arith.constant 0 : i32
    %c0_i32_1 = arith.constant 0 : i32
    return %c0_i32, %c0_i32_0 : i32, i32
  }
  func.func @transform_13(%arg0: i32) -> (i32, i32) {
    %c0_i32 = arith.constant 0 : i32
    %c0_i32_0 = arith.constant 0 : i32
    %c0_i32_1 = arith.constant 0 : i32
    return %c0_i32, %c0_i32_0 : i32, i32
  }
  func.func @transform_14(%arg0: i32) -> (i32, i32) {
    %c0_i32 = arith.constant 0 : i32
    %c0_i32_0 = arith.constant 0 : i32
    %c0_i32_1 = arith.constant 0 : i32
    return %c0_i32, %c0_i32_0 : i32, i32
  }
  func.func @transform_15(%arg0: i32) -> (i32, i32) {
    %c0_i32 = arith.constant 0 : i32
    %c0_i32_0 = arith.constant 0 : i32
    %c0_i32_1 = arith.constant 0 : i32
    return %c0_i32, %c0_i32_0 : i32, i32
  }
  func.func @transform_16(%arg0: i32) -> (i32, i32) {
    %c0_i32 = arith.constant 0 : i32
    %c0_i32_0 = arith.constant 0 : i32
    %c0_i32_1 = arith.constant 0 : i32
    return %c0_i32, %c0_i32_0 : i32, i32
  }
  func.func @transform_17(%arg0: i32) -> (i32, i32) {
    %c0_i32 = arith.constant 0 : i32
    %c0_i32_0 = arith.constant 0 : i32
    return %c0_i32, %arg0 : i32, i32
  }
}

</mosaic_0001>

<bundles_post_ra>
// kernel: tpu_custom_call.1
= control target key start
LH: loop header
LB: loop body
LE: loop exit
PB: predicated region body
PF: predicated region fallthrough
CT: control target
= control target key end

     0   :  { %s1732_s0 = inlined_call_operand.vmem [shape: f32[8,128], index: 0, kind: input, shape index: {}]   ;;  %s1733_s1 = inlined_call_operand.vmem [shape: f32[32,4], index: 1, kind: input, shape index: {}]   ;;  %s1734_s2 = inlined_call_operand.vmem [shape: f32[32,1], index: 2, kind: input, shape index: {}]   ;;  %s1735_s3 = inlined_call_operand.vmem [shape: f32[32,32], index: 3, kind: input, shape index: {}]   ;;  %s1736_s4 = inlined_call_operand.vmem [shape: f32[32,1], index: 4, kind: input, shape index: {}]   ;;  %s1737_s5 = inlined_call_operand.vmem [shape: f32[32,32], index: 5, kind: input, shape index: {}]   ;;  %s1738_s6 = inlined_call_operand.vmem [shape: f32[32,2], index: 6, kind: input, shape index: {}]   ;;  %s1739_s7 = inlined_call_operand.vmem [shape: f32[32,1], index: 7, kind: input, shape index: {}]   ;;  %s1740_s8 = inlined_call_operand.vmem [shape: f32[32,32], index: 8, kind: input, shape index: {}]   ;;  %s1741_s9 = inlined_call_operand.vmem [shape: f32[32,1], index: 9, kind: input, shape index: {}]   ;;  %s1742_s10 = inlined_call_operand.vmem [shape: f32[32,32], index: 10, kind: input, shape index: {}]   ;;  %s1743_s11 = inlined_call_operand.vmem [shape: f32[32,1], index: 11, kind: input, shape index: {}]   ;;  %s1744_s12 = inlined_call_operand.vmem [shape: f32[32,1], index: 12, kind: input, shape index: {}]   ;;  %s1745_s13 = inlined_call_operand.vmem [shape: f32[32,32], index: 13, kind: input, shape index: {}]   ;;  %s1746_s14 = inlined_call_operand.vmem [shape: f32[32,1], index: 14, kind: input, shape index: {}]   ;;  %s1747_s15 = inlined_call_operand.vmem [shape: f32[32,1], index: 15, kind: input, shape index: {}]   ;;  %s1748_s16 = inlined_call_operand.<no memory space> [shape: f32[1,1], index: 16, kind: input, shape index: {}]   ;;  %s1749_s17 = inlined_call_operand.hbm [shape: f32[1,128], index: 17, kind: output, shape index: {}]  }
   0x1   :  { %1752 = sst [smem:[#allocation6_spill]] %s1732_s0  ;;  %v22_v0 = vstv %s1748_s16 }
   0x2   :  { %1753 = sst [smem:[#allocation7_spill]] %s1733_s1  ;;  %23 = vst [vmem:[#allocation2] sm:$0x1] %v22_v0 }
   0x3   :  { %s1754_s28 = sld [smem:[#allocation7_spill]]  ;;  %v1380_v2 = vmov 3   ;;  %v1381_v3 = vmov 1   ;;  %v1382_v5 = vmov 2  }
   0x4   :  { %1289 = vset.pattern.permute.xlu0 %v1380_v2  ;;  %1285 = vset.pattern.permute.xlu1 %v1381_v3 }
   0x9   :  { %v60_v1 = vld [vmem:[%s1754_s28] sm:$0xff]  ;;  %v61_v4 = vld [vmem:[%s1754_s28 + $0x8] sm:$0xff] }
   0xa   :  { %162 = vperm.xlu0 %1289, %v60_v1   ;;  %97 = vperm.xlu1 %1285, %v60_v1  }
   0xe   :  { %1290 = vset.pattern.permute.xlu0 %v1382_v5  ;;  %101 = vperm.xlu1 %1285, %v61_v4  }
   0xf   :  { %130 = vperm.xlu0 %1290, %v60_v1  }
  0x10   :  { %24 = vsyncpa [#allocation4], 0  ;;  %v63_v6 = vld [vmem:[%s1754_s28 + $0x18] sm:$0xff]  ;;  %v62_v7 = vld [vmem:[%s1754_s28 + $0x10] sm:$0xff]  ;;  %v1383_v8 = vmov 0   ;;  %vm265_vm0 = vcmask 261120   ;;  %v112_v32 = vlaneseq }
  0x11   :  { %v189_v9 = vld [vmem:[%s1734_s2] sm:$0xff]  ;;  %v192_v10 = vld [vmem:[%s1734_s2 + $0x18] sm:$0xff]  ;;  %v242_v11 = vld [vmem:[%s1736_s4 + $0x8] sm:$0xff]  ;;  %s1755_s16 = sld [smem:[#allocation6_spill]] }
  0x12   :  { %1286 = vset.pattern.permute.xlu1 %v1382_v5  ;;  %v244_v12 = vld [vmem:[%s1736_s4 + $0x18] sm:$0xff]  ;;  %v388_v13 = vld [vmem:[%s1739_s7 + $0x8] sm:$0xff]  ;;  %v1519_v16 = vld [vmem:[%s1738_s6 + $0x10] sm:$0xff]  ;;  %v113_v36 = vshrl.u32 %v112_v32, 7 }
  0x13   :  { %142 = vperm.xlu0 %1290, %v63_v6   ;;  %134 = vperm.xlu1 %1286, %v61_v4   ;;  %v509_v14 = vld [vmem:[%s1738_s6 + $0x8] sm:$0xff]  ;;  %v191_v17 = vld [vmem:[%s1734_s2 + $0x10] sm:$0xff]  ;;  %v241_v18 = vld [vmem:[%s1736_s4] sm:$0xff] }
  0x14   :  { %v190_v15 = vld [vmem:[%s1734_s2 + $0x8] sm:$0xff]  ;;  %v243_v19 = vld [vmem:[%s1736_s4 + $0x10] sm:$0xff]  ;;  %v387_v20 = vld [vmem:[%s1739_s7] sm:$0xff]  ;;  %v1553_v40 = vsub.s32 0, %v113_v36 }
  0x15   :  { %v508_v21 = vld [vmem:[%s1738_s6] sm:$0xff] }
  0x16   :  { %v237_v22 = vld [vmem:[%s1735_s3] sm:$0xff] }
  0x17   :  { %1293 = vset.pattern.permute.xlu0 %v1383_v8  ;;  %1287 = vset.pattern.permute.xlu1 %v1383_v8  ;;  %v124_v25 = vld [vmem:[%s1755_s16 + $0x3] sm:$0x1]  ;;  %v157_v26 = vld [vmem:[%s1755_s16 + $0x4] sm:$0x1]  ;;  %v92_v33 = vld [vmem:[%s1755_s16 + $0x2] sm:$0x1] }
  0x18   :  { %66 = vperm.xlu0 %1293, %v60_v1   ;;  %76 = vperm.xlu1 %1287, %v62_v7   ;;  %v126_v28 = vmul.f32 0.6666667, %v124_v25  ;;  %v158_v30 = vmul.f32 0.6666667, %v157_v26  ;;  %v94_v35 = vmul.f32 0.5, %v92_v33 }
  0x19   :  { %1174 = vmatprep.mubr.msk.f32.mxu0 %vm265_vm0, %v237_v22  ;;  %v1101_v44 = vld [vmem:[%s1755_s16 + $0x1] ss:$0 sm:$0xff] }
  0x1a   :  { %1302 = vlog2.f32 %v126_v28  ;;  %v1102_v39 = vadd.f32 -1.0, %v94_v35 }
  0x1b   :  { %1304 = vlog2.f32 %v158_v30 }
  0x1c   :  { %71 = vperm.xlu0 %1293, %v61_v4   ;;  %1288 = vset.pattern.permute.xlu1 %v1381_v3  ;;  %v115_v45 = vrot.slane %v1102_v39, %v1553_v40 }
  0x1d   :  { %105 = vperm.xlu1 %1288, %v62_v7  }
  0x20   :  { %81 = vperm.xlu0 %1293, %v63_v6  }
  0x21   :  { %109 = vperm.xlu1 %1288, %v63_v6  }
  0x24   :  { %195 = vperm.xlu0 %1293, %v189_v9   ;;  %v1303_v41 = vpop.eup %1302 }
  0x25   :  { %1291 = vset.pattern.permute.xlu1 %v1380_v2  ;;  %v1305_v43 = vpop.eup %1304  ;;  %v128_v46 = vmul.f32 0.6931472, %v1303_v41 }
  0x26   :  { %166 = vperm.xlu1 %1291, %v61_v4   ;;  %v160_v49 = vmul.f32 0.6931472, %v1305_v43 }
  0x27   :  { %v148_v52 = vrot.slane %v128_v46, %v1553_v40 }
  0x28   :  { %210 = vperm.xlu0 %1293, %v192_v10   ;;  %v180_v53 = vrot.slane %v160_v49, %v1553_v40 }
  0x2a   :  { %1292 = vset.pattern.permute.xlu1 %v1382_v5 }
  0x2b   :  { %138 = vperm.xlu1 %1292, %v62_v7  }
  0x2c   :  { %252 = vperm.xlu0 %1293, %v242_v11  }
  0x2f   :  { %1294 = vset.pattern.permute.xlu1 %v1380_v2 }
  0x30   :  { %262 = vperm.xlu0 %1293, %v244_v12   ;;  %170 = vperm.xlu1 %1294, %v62_v7  }
  0x34   :  { %398 = vperm.xlu0 %1293, %v388_v13   ;;  %174 = vperm.xlu1 %1294, %v63_v6  }
  0x38   :  { %520 = vperm.xlu0 %1293, %v509_v14   ;;  %1295 = vset.pattern.permute.xlu1 %v1383_v8 }
  0x39   :  { %200 = vperm.xlu1 %1295, %v190_v15  }
  0x3c   :  { %525 = vperm.xlu0 %1293, %v1519_v16  }
  0x3d   :  { %205 = vperm.xlu1 %1295, %v191_v17  }
  0x40   :  { %1298 = vset.pattern.permute.xlu0 %v1381_v3 }
  0x41   :  { %247 = vperm.xlu1 %1295, %v241_v18   ;;  %551 = vperm.xlu0 %1298, %v509_v14  }
  0x45   :  { %257 = vperm.xlu1 %1295, %v243_v19  }
  0x49   :  { %393 = vperm.xlu1 %1295, %v387_v20  }
  0x4d   :  { %515 = vperm.xlu1 %1295, %v508_v21  }
  0x51   :  { %1296 = vset.pattern.permute.xlu1 %v1381_v3 }
  0x52   :  { %547 = vperm.xlu1 %1296, %v508_v21  }
  0x56   :  { %1297 = vset.pattern.permute.xlu1 %v1383_v8 }
  0x89   :  { %v98_v23 = vpop.permute.xlu1 %97  ;;  %v163_v24 = vpop.permute.xlu0 %162 }
  0x8a   :  { %v116_v51 = vmul.f32 %v115_v45, %v98_v23  ;;  %v181_v58 = vmul.f32 %v180_v53, %v163_v24 }
  0x8d   :  { %v102_v27 = vpop.permute.xlu1 %101 }
  0x8e   :  { %v131_v29 = vpop.permute.xlu0 %130  ;;  %v117_v2 = vmul.f32 %v115_v45, %v102_v27 }
  0x8f   :  { %v149_v54 = vmul.f32 %v148_v52, %v131_v29 }
  0x92   :  { %v135_v31 = vpop.permute.xlu1 %134  ;;  %v143_v34 = vpop.permute.xlu0 %142 }
  0x93   :  { %v152_v6 = vmul.f32 %v148_v52, %v143_v34  ;;  %v150_v10 = vmul.f32 %v148_v52, %v135_v31 }
  0x97   :  { %v77_v37 = vpop.permute.xlu1 %76  ;;  %v67_v38 = vpop.permute.xlu0 %66 }
  0x98   :  { %v88_v50 = vmul.f32 %v1101_v44, %v67_v38  ;;  %v90_v18 = vmul.f32 %v1101_v44, %v77_v37 }
  0x9a   :  { %v120_v55 = vadd.f32 %v116_v51, %v88_v50 }
  0x9b   :  { %v72_v47 = vpop.permute.xlu0 %71 }
  0x9c   :  { %v106_v42 = vpop.permute.xlu1 %105  ;;  %v153_v59 = vadd.f32 %v149_v54, %v120_v55  ;;  %v89_v0 = vmul.f32 %v1101_v44, %v72_v47  ;;  %v238_v55 = vld [vmem:[%s1735_s3 + $0x8] sm:$0xff] }
  0x9d   :  { %v118_v11 = vmul.f32 %v115_v45, %v106_v42 }
  0x9e   :  { %v185_v1 = vadd.f32 %v181_v58, %v153_v59  ;;  %v121_v9 = vadd.f32 %v117_v2, %v89_v0  ;;  %v383_v58 = vld [vmem:[%s1737_s5] sm:$0xff]  ;;  %v389_v59 = vld [vmem:[%s1739_s7 + $0x10] sm:$0xff] }
  0x9f   :  { %v82_v57 = vpop.permute.xlu0 %81  ;;  %v122_v22 = vadd.f32 %v118_v11, %v90_v18  ;;  %1188 = vmatprep.mubr.msk.f32.mxu1 %vm265_vm0, %v383_v58  ;;  %403 = vperm.xlu1 %1297, %v389_v59  }
  0xa0   :  { %v110_v48 = vpop.permute.xlu1 %109  ;;  %v91_v61 = vmul.f32 %v1101_v44, %v82_v57  ;;  %v154_v20 = vadd.f32 %v150_v10, %v121_v9  ;;  %v240_v57 = vld [vmem:[%s1735_s3 + $0x18] sm:$0xff] }
  0xa1   :  { %v119_v62 = vmul.f32 %v115_v45, %v110_v48 }
  0xa3   :  { %v196_v63 = vpop.permute.xlu0 %195  ;;  %v123_v7 = vadd.f32 %v119_v62, %v91_v61  ;;  %v390_v61 = vld [vmem:[%s1739_s7 + $0x18] sm:$0xff] }
  0xa4   :  { %v213_v4 = vadd.f32 %v196_v63, %v185_v1  ;;  %408 = vperm.xlu1 %1297, %v390_v61  }
  0xa5   :  { %v167_v56 = vpop.permute.xlu1 %166  ;;  %v156_v15 = vadd.f32 %v152_v6, %v123_v7 }
  0xa6   :  { %v217_v12 = vmul.f32 0.5, %v213_v4  ;;  %v182_v13 = vmul.f32 %v180_v53, %v167_v56  ;;  %v239_v56 = vld [vmem:[%s1735_s3 + $0x10] sm:$0xff] }
  0xa7   :  { %v211_v23 = vpop.permute.xlu0 %210 }
  0xa8   :  { %1306 = vtanh.f32 %v217_v12  ;;  %v186_v25 = vadd.f32 %v182_v13, %v154_v20 }
  0xaa   :  { %v139_v60 = vpop.permute.xlu1 %138 }
  0xab   :  { %v151_v19 = vmul.f32 %v148_v52, %v139_v60  ;;  %v511_v60 = vld [vmem:[%s1738_s6 + $0x18] sm:$0xff]  ;;  %v253_v62 = vpop.permute.xlu0 %252 }
  0xac   :  { %559 = vperm.xlu0 %1298, %v511_v60   ;;  %530 = vperm.xlu1 %1297, %v511_v60  }
  0xad   :  { %v155_v28 = vadd.f32 %v151_v19, %v122_v22 }
  0xaf   :  { %v171_v5 = vpop.permute.xlu1 %170  ;;  %v263_v6 = vpop.permute.xlu0 %262 }
  0xb0   :  { %v183_v24 = vmul.f32 %v180_v53, %v171_v5  ;;  %1301 = vset.pattern.permute.xlu0 %v1383_v8  ;;  %1299 = vset.pattern.permute.xlu1 %v1381_v3 }
  0xb1   :  { %555 = vperm.xlu1 %1299, %v1519_v16  }
  0xb2   :  { %v187_v32 = vadd.f32 %v183_v24, %v155_v28  ;;  %v1307_v36 = vpop.eup %1306 }
  0xb3   :  { %v175_v14 = vpop.permute.xlu1 %174  ;;  %v225_v37 = vadd.f32 1.0, %v1307_v36  ;;  %v598_v36 = vld [vmem:[%s1741_s9] sm:$0xff]  ;;  %v399_v61 = vpop.permute.xlu0 %398 }
  0xb4   :  { %v184_v17 = vmul.f32 %v180_v53, %v175_v14 }
  0xb5   :  { %v229_v41 = vmul.f32 0.5, %v225_v37  ;;  %1300 = vset.pattern.permute.xlu1 %v1383_v8  ;;  %v600_v37 = vld [vmem:[%s1741_s9 + $0x10] sm:$0xff] }
  0xb6   :  { %v188_v21 = vadd.f32 %v184_v17, %v156_v15  ;;  %604 = vperm.xlu1 %1300, %v598_v36   ;;  %614 = vperm.xlu0 %1301, %v600_v37  }
  0xb7   :  { %v233_v46 = vmul.f32 %v229_v41, %v213_v4  ;;  %v601_v41 = vld [vmem:[%s1741_s9 + $0x18] sm:$0xff] }
  0xb8   :  { %v216_v26 = vadd.f32 %v211_v23, %v188_v21  ;;  %v201_v27 = vpop.permute.xlu1 %200 }
  0xb9   :  { %v214_v29 = vadd.f32 %v201_v27, %v186_v25 }
  0xba   :  { %v220_v30 = vmul.f32 0.5, %v216_v26 }
  0xbb   :  { %v218_v31 = vmul.f32 0.5, %v214_v29 }
  0xbc   :  { %1308 = vtanh.f32 %v220_v30  ;;  %v206_v33 = vpop.permute.xlu1 %205 }
  0xbd   :  { %1310 = vtanh.f32 %v218_v31  ;;  %v215_v34 = vadd.f32 %v206_v33, %v187_v32  ;;  %v384_v32 = vld [vmem:[%s1737_s5 + $0x8] sm:$0xff]  ;;  %v385_v33 = vld [vmem:[%s1737_s5 + $0x10] sm:$0xff] }
  0xbf   :  { %v219_v35 = vmul.f32 0.5, %v215_v34 }
  0xc0   :  { %v248_v63 = vpop.permute.xlu1 %247 }
  0xc1   :  { %1312 = vtanh.f32 %v219_v35  ;;  %v594_v35 = vld [vmem:[%s1740_s8] sm:$0xff] }
  0xc4   :  { %v258_v10 = vpop.permute.xlu1 %257 }
  0xc6   :  { %v1309_v38 = vpop.eup %1308 }
  0xc7   :  { %v1311_v39 = vpop.eup %1310  ;;  %v228_v43 = vadd.f32 1.0, %v1309_v38  ;;  %v599_v38 = vld [vmem:[%s1741_s9 + $0x8] sm:$0xff] }
  0xc8   :  { %v226_v42 = vadd.f32 1.0, %v1311_v39  ;;  %v745_v39 = vld [vmem:[%s1743_s11 + $0x8] sm:$0xff]  ;;  %609 = vperm.xlu1 %1300, %v599_v38   ;;  %v394_v58 = vpop.permute.xlu1 %393 }
  0xc9   :  { %v232_v49 = vmul.f32 0.5, %v228_v43  ;;  %755 = vperm.xlu0 %1301, %v745_v39   ;;  %v744_v43 = vld [vmem:[%s1743_s11] sm:$0xff] }
  0xca   :  { %v230_v44 = vmul.f32 0.5, %v226_v42  ;;  %v747_v42 = vld [vmem:[%s1743_s11 + $0x18] sm:$0xff] }
  0xcb   :  { %v1313_v45 = vpop.eup %1312  ;;  %v236_v53 = vmul.f32 %v232_v49, %v216_v26  ;;  %v875_v49 = vld [vmem:[%s1744_s12 + $0x10] sm:$0xff] }
  0xcc   :  { %v234_v47 = vmul.f32 %v230_v44, %v214_v29  ;;  %v227_v48 = vadd.f32 1.0, %v1313_v45  ;;  %619 = vperm.xlu1 %1300, %v601_v41   ;;  %v874_v44 = vld [vmem:[%s1744_s12 + $0x8] sm:$0xff]  ;;  %v746_v45 = vld [vmem:[%s1743_s11 + $0x10] sm:$0xff]  ;;  %v516_v59 = vpop.permute.xlu1 %515 }
  0xcd   :  { %765 = vperm.xlu0 %1301, %v747_v42  }
  0xce   :  { %v231_v50 = vmul.f32 0.5, %v227_v48  ;;  %v1236_v51 = vpack.c.bf16 %v234_v47, %v233_v46  ;;  %v876_v46 = vld [vmem:[%s1744_s12 + $0x18] sm:$0xff]  ;;  %v873_v47 = vld [vmem:[%s1744_s12] sm:$0xff]  ;;  %v910_v48 = vld [vmem:[%s1746_s14 + $0x8] sm:$0xff] }
  0xd0   :  { %v235_v52 = vmul.f32 %v231_v50, %v215_v34  ;;  %1237 = vmatprep.subr.bf16.mxu0 %v1236_v51  ;;  %v386_v34 = vld [vmem:[%s1737_s5 + $0x18] sm:$0xff]  ;;  %750 = vperm.xlu1 %1300, %v744_v43  }
  0xd1   :  { %1239 = vmatpush3.bf16.msra.mxu0 %v1236_v51  ;;  %884 = vperm.xlu0 %1301, %v874_v44   ;;  %v912_v50 = vld [vmem:[%s1746_s14 + $0x18] sm:$0xff]  ;;  %v909_v51 = vld [vmem:[%s1746_s14] sm:$0xff]  ;;  %v548_v60 = vpop.permute.xlu1 %547 }
  0xd2   :  { %v1240_v54 = vpack.c.bf16 %v236_v53, %v235_v52  ;;  %v1035_v52 = vld [vmem:[%s1747_s15 + $0x8] sm:$0xff]  ;;  %v911_v53 = vld [vmem:[%s1746_s14 + $0x10] sm:$0xff] }
  0xd4   :  { %1241 = vmatprep.subr.bf16.mxu0 %v1240_v54  ;;  %760 = vperm.xlu1 %1300, %v746_v45  }
  0xd5   :  { %1243 = vmatpush3.bf16.msra.mxu0 %v1240_v54  ;;  %894 = vperm.xlu0 %1301, %v876_v46   ;;  %v1037_v54 = vld [vmem:[%s1747_s15 + $0x18] sm:$0xff] }
  0xd8   :  { %1175 = vmatmul.mubr.msk.f32.vlgmr.msra.gmra.mrb[0].mxu0 %vm265_vm0, %v238_v55  ;;  %879 = vperm.xlu1 %1300, %v873_v47   ;;  %v1034_v55 = vld [vmem:[%s1747_s15] sm:$0xff] }
  0xd9   :  { %1177 = vmatprep.mubr.msk.f32.mxu0 %vm265_vm0, %v239_v56  ;;  %920 = vperm.xlu0 %1301, %v910_v48   ;;  %v1036_v56 = vld [vmem:[%s1747_s15 + $0x10] sm:$0xff] }
  0xdc   :  { %1178 = vmatmul.mubr.msk.f32.gmra.mrb[2].mxu0 %vm265_vm0, %v240_v57  ;;  %889 = vperm.xlu1 %1300, %v875_v49   ;;  %v1071_v57 = vld [vmem:[#allocation2] sm:$0x1] }
  0xdd   :  { %1202 = vmatprep.mubr.msk.f32.mxu0 %vm265_vm0, %v594_v35  ;;  %930 = vperm.xlu0 %1301, %v912_v50  }
  0xe0   :  { %915 = vperm.xlu1 %1300, %v909_v51  }
  0xe1   :  { %1045 = vperm.xlu0 %1301, %v1035_v52  }
  0xe4   :  { %925 = vperm.xlu1 %1300, %v911_v53  }
  0xe5   :  { %1055 = vperm.xlu0 %1301, %v1037_v54  }
  0xe8   :  { %1040 = vperm.xlu1 %1300, %v1034_v55   ;;  %v595_v55 = vld [vmem:[%s1740_s8 + $0x8] sm:$0xff] }
  0xec   :  { %1050 = vperm.xlu1 %1300, %v1036_v56   ;;  %v596_v56 = vld [vmem:[%s1740_s8 + $0x10] sm:$0xff] }
  0xf0   :  { %1074 = vperm.xlu1 %1300, %v1071_v57   ;;  %v597_v57 = vld [vmem:[%s1740_s8 + $0x18] sm:$0xff] }
 0x1ab   :  { %v1176_v0 = vpop.f32.mrb[0].mxu0 }
 0x1ac   :  { %v350_v1 = vadd.f32 %v1176_v0, %v253_v62  ;;  %v344_v2 = vpop.f32.mrb[1].mxu0  ;;  %v404_v62 = vpop.permute.xlu1 %403 }
 0x1ad   :  { %v345_v4 = vadd.f32 %v344_v2, %v248_v63  ;;  %v521_v63 = vpop.permute.xlu0 %520  ;;  %v1111_v2 = vld [vmem:[%s1755_s16 + $0x5] ss:$0 sm:$0xff] }
 0x1ae   :  { %v364_v5 = vmul.f32 0.5, %v350_v1 }
 0x1af   :  { %v363_v7 = vmul.f32 0.5, %v345_v4  ;;  %v1179_v9 = vpop.f32.mrb[2].mxu0 }
 0x1b0   :  { %1314 = vtanh.f32 %v364_v5  ;;  %v360_v11 = vadd.f32 %v1179_v9, %v263_v6  ;;  %v354_v12 = vpop.f32.mrb[3].mxu0  ;;  %v409_v0 = vpop.permute.xlu1 %408  ;;  %v1112_v6 = vld [vmem:[%s1755_s16 + $0x6] ss:$0 sm:$0xff]  ;;  %v538_v9 = vmul.f32 %v1111_v2, %v521_v63 }
 0x1b1   :  { %1316 = vtanh.f32 %v363_v7  ;;  %v355_v3 = vadd.f32 %v354_v12, %v258_v10 }
 0x1b2   :  { %v366_v13 = vmul.f32 0.5, %v360_v11 }
 0x1b3   :  { %v365_v16 = vmul.f32 0.5, %v355_v3 }
 0x1b4   :  { %1318 = vtanh.f32 %v366_v13  ;;  %v531_v5 = vpop.permute.xlu1 %530 }
 0x1b5   :  { %1320 = vtanh.f32 %v365_v16 }
 0x1ba   :  { %v1315_v8 = vpop.eup %1314 }
 0x1bb   :  { %v1317_v14 = vpop.eup %1316  ;;  %v372_v15 = vadd.f32 1.0, %v1315_v8  ;;  %v556_v8 = vpop.permute.xlu1 %555 }
 0x1bc   :  { %v371_v17 = vadd.f32 1.0, %v1317_v14  ;;  %v566_v14 = vmul.f32 %v1112_v6, %v548_v60 }
 0x1bd   :  { %v376_v18 = vmul.f32 0.5, %v372_v15 }
 0x1be   :  { %v1319_v19 = vpop.eup %1318  ;;  %v375_v20 = vmul.f32 0.5, %v371_v17 }
 0x1bf   :  { %v1321_v21 = vpop.eup %1320  ;;  %v380_v22 = vmul.f32 %v376_v18, %v350_v1  ;;  %v374_v23 = vadd.f32 1.0, %v1319_v19  ;;  %v526_v1 = vpop.permute.xlu0 %525  ;;  %v540_v19 = vmul.f32 %v1111_v2, %v531_v5 }
 0x1c0   :  { %v379_v24 = vmul.f32 %v375_v20, %v345_v4  ;;  %v373_v25 = vadd.f32 1.0, %v1321_v21 }
 0x1c1   :  { %v378_v26 = vmul.f32 0.5, %v374_v23  ;;  %v539_v23 = vmul.f32 %v1111_v2, %v526_v1 }
 0x1c2   :  { %v377_v27 = vmul.f32 0.5, %v373_v25  ;;  %v1244_v28 = vpack.c.bf16 %v380_v22, %v379_v24 }
 0x1c3   :  { %v382_v29 = vmul.f32 %v378_v26, %v360_v11  ;;  %v552_v4 = vpop.permute.xlu0 %551  ;;  %v568_v26 = vmul.f32 %v1112_v6, %v556_v8 }
 0x1c4   :  { %v381_v30 = vmul.f32 %v377_v27, %v355_v3  ;;  %1245 = vmatprep.subr.bf16.mxu1 %v1244_v28  ;;  %v567_v10 = vmul.f32 %v1112_v6, %v552_v4  ;;  %v537_v3 = vmul.f32 %v1111_v2, %v516_v59  ;;  %v605_v59 = vpop.permute.xlu1 %604 }
 0x1c5   :  { %1247 = vmatpush3.bf16.msra.mxu1 %v1244_v28 }
 0x1c6   :  { %v1248_v31 = vpack.c.bf16 %v382_v29, %v381_v30 }
 0x1c7   :  { %v560_v17 = vpop.permute.xlu0 %559 }
 0x1c8   :  { %1249 = vmatprep.subr.bf16.mxu1 %v1248_v31  ;;  %v569_v28 = vmul.f32 %v1112_v6, %v560_v17  ;;  %v610_v60 = vpop.permute.xlu1 %609 }
 0x1c9   :  { %1251 = vmatpush3.bf16.msra.mxu1 %v1248_v31 }
 0x1cb   :  { %v615_v6 = vpop.permute.xlu0 %614 }
 0x1cc   :  { %1189 = vmatmul.mubr.msk.f32.vlgmr.msra.gmra.mrb[0].mxu1 %vm265_vm0, %v384_v32  ;;  %v620_v2 = vpop.permute.xlu1 %619 }
 0x1cd   :  { %1191 = vmatprep.mubr.msk.f32.mxu1 %vm265_vm0, %v385_v33 }
 0x1d0   :  { %1192 = vmatmul.mubr.msk.f32.gmra.mrb[2].mxu1 %vm265_vm0, %v386_v34 }
 0x29f   :  { %v1190_v7 = vpop.f32.mrb[0].mxu1 }
 0x2a0   :  { %v495_v11 = vadd.f32 %v1190_v7, %v399_v61  ;;  %v489_v12 = vpop.f32.mrb[1].mxu1 }
 0x2a1   :  { %v490_v13 = vadd.f32 %v489_v12, %v394_v58  ;;  %v740_v58 = vld [vmem:[%s1742_s10] sm:$0xff] }
 0x2a2   :  { %v542_v16 = vadd.f32 %v538_v9, %v495_v11  ;;  %1216 = vmatprep.mubr.msk.f32.mxu1 %vm265_vm0, %v740_v58 }
 0x2a3   :  { %v541_v15 = vadd.f32 %v537_v3, %v490_v13  ;;  %v1193_v18 = vpop.f32.mrb[2].mxu1 }
 0x2a4   :  { %v571_v20 = vadd.f32 %v567_v10, %v542_v16  ;;  %v505_v21 = vadd.f32 %v1193_v18, %v409_v0  ;;  %v499_v22 = vpop.f32.mrb[3].mxu1 }
 0x2a5   :  { %v570_v24 = vadd.f32 %v566_v14, %v541_v15  ;;  %v500_v25 = vadd.f32 %v499_v22, %v404_v62 }
 0x2a6   :  { %v575_v27 = vmul.f32 0.5, %v571_v20  ;;  %v544_v29 = vadd.f32 %v540_v19, %v505_v21 }
 0x2a7   :  { %v574_v30 = vmul.f32 0.5, %v570_v24  ;;  %v543_v31 = vadd.f32 %v539_v23, %v500_v25 }
 0x2a8   :  { %1322 = vtanh.f32 %v575_v27  ;;  %v573_v32 = vadd.f32 %v569_v28, %v544_v29  ;;  %v741_v29 = vld [vmem:[%s1742_s10 + $0x8] sm:$0xff] }
 0x2a9   :  { %1324 = vtanh.f32 %v574_v30  ;;  %v572_v33 = vadd.f32 %v568_v26, %v543_v31  ;;  %v742_v30 = vld [vmem:[%s1742_s10 + $0x10] sm:$0xff]  ;;  %v743_v31 = vld [vmem:[%s1742_s10 + $0x18] sm:$0xff] }
 0x2aa   :  { %v577_v34 = vmul.f32 0.5, %v573_v32 }
 0x2ab   :  { %v576_v35 = vmul.f32 0.5, %v572_v33 }
 0x2ac   :  { %1326 = vtanh.f32 %v577_v34  ;;  %v756_v34 = vpop.permute.xlu0 %755 }
 0x2ad   :  { %1328 = vtanh.f32 %v576_v35  ;;  %v751_v35 = vpop.permute.xlu1 %750 }
 0x2b2   :  { %v1323_v36 = vpop.eup %1322 }
 0x2b3   :  { %v1325_v37 = vpop.eup %1324  ;;  %v583_v38 = vadd.f32 1.0, %v1323_v36  ;;  %v766_v36 = vpop.permute.xlu0 %765 }
 0x2b4   :  { %v582_v39 = vadd.f32 1.0, %v1325_v37  ;;  %v761_v37 = vpop.permute.xlu1 %760 }
 0x2b5   :  { %v587_v41 = vmul.f32 0.5, %v583_v38  ;;  %v1117_v38 = vld [vmem:[%s1755_s16] ss:$0 sm:$0xff] }
 0x2b6   :  { %v1327_v42 = vpop.eup %1326  ;;  %v586_v43 = vmul.f32 0.5, %v582_v39  ;;  %v773_v39 = vmul.f32 %v1117_v38, %v756_v34 }
 0x2b7   :  { %v1329_v44 = vpop.eup %1328  ;;  %v591_v45 = vmul.f32 %v587_v41, %v571_v20  ;;  %v585_v46 = vadd.f32 1.0, %v1327_v42  ;;  %v772_v41 = vmul.f32 %v1117_v38, %v751_v35  ;;  %v885_v42 = vpop.permute.xlu0 %884 }
 0x2b8   :  { %v584_v47 = vadd.f32 1.0, %v1329_v44  ;;  %v590_v48 = vmul.f32 %v586_v43, %v570_v24  ;;  %v880_v44 = vpop.permute.xlu1 %879 }
 0x2b9   :  { %v589_v49 = vmul.f32 0.5, %v585_v46 }
 0x2ba   :  { %v588_v50 = vmul.f32 0.5, %v584_v47  ;;  %v1252_v51 = vpack.c.bf16 %v591_v45, %v590_v48  ;;  %v775_v48 = vmul.f32 %v1117_v38, %v766_v36 }
 0x2bb   :  { %v593_v52 = vmul.f32 %v589_v49, %v573_v32  ;;  %v905_v32 = vld [vmem:[%s1745_s13] sm:$0xff] }
 0x2bc   :  { %v592_v53 = vmul.f32 %v588_v50, %v572_v33  ;;  %1253 = vmatprep.subr.bf16.mxu0 %v1252_v51  ;;  %v907_v33 = vld [vmem:[%s1745_s13 + $0x10] sm:$0xff]  ;;  %v774_v50 = vmul.f32 %v1117_v38, %v761_v37 }
 0x2bd   :  { %1255 = vmatpush3.bf16.msra.mxu0 %v1252_v51 }
 0x2be   :  { %v1256_v54 = vpack.c.bf16 %v593_v52, %v592_v53 }
 0x2c0   :  { %1257 = vmatprep.subr.bf16.mxu0 %v1256_v54 }
 0x2c1   :  { %1259 = vmatpush3.bf16.msra.mxu0 %v1256_v54 }
 0x2c4   :  { %1203 = vmatmul.mubr.msk.f32.vlgmr.msra.gmra.mrb[4].mxu0 %vm265_vm0, %v595_v55  ;;  %v895_v55 = vpop.permute.xlu0 %894 }
 0x2c5   :  { %1205 = vmatprep.mubr.msk.f32.mxu0 %vm265_vm0, %v596_v56 }
 0x2c8   :  { %1206 = vmatmul.mubr.msk.f32.gmra.mrb[6].mxu0 %vm265_vm0, %v597_v57  ;;  %v890_v57 = vpop.permute.xlu1 %889 }
 0x2c9   :  { %1230 = vmatprep.mubr.msk.f32.mxu0 %vm265_vm0, %v905_v32 }
 0x397   :  { %v1204_v61 = vpop.f32.mrb[4].mxu0 }
 0x398   :  { %v706_v62 = vadd.f32 %v1204_v61, %v610_v60  ;;  %v700_v63 = vpop.f32.mrb[5].mxu0 }
 0x399   :  { %v701_v0 = vadd.f32 %v700_v63, %v605_v59 }
 0x39a   :  { %v720_v1 = vmul.f32 0.5, %v706_v62 }
 0x39b   :  { %v719_v4 = vmul.f32 0.5, %v701_v0  ;;  %v1207_v5 = vpop.f32.mrb[6].mxu0 }
 0x39c   :  { %1330 = vtanh.f32 %v720_v1  ;;  %v716_v7 = vadd.f32 %v1207_v5, %v620_v2  ;;  %v710_v9 = vpop.f32.mrb[7].mxu0  ;;  %v906_v2 = vld [vmem:[%s1745_s13 + $0x8] sm:$0xff]  ;;  %v916_v5 = vpop.permute.xlu1 %915 }
 0x39d   :  { %1332 = vtanh.f32 %v719_v4  ;;  %v711_v10 = vadd.f32 %v710_v9, %v615_v6  ;;  %v908_v4 = vld [vmem:[%s1745_s13 + $0x18] sm:$0xff]  ;;  %v921_v6 = vpop.permute.xlu0 %920  ;;  %s1384_s13 = smov [#allocation3]  }
 0x39e   :  { %v722_v11 = vmul.f32 0.5, %v716_v7  ;;  %s1093_s19 = sshll.u32 %s1384_s13, 4  ;;  %s1094_s19 = int_to_ptr.vmem [resolvable:$true] %s1093_s19 }
 0x39f   :  { %v721_v12 = vmul.f32 0.5, %v711_v10  ;;  %s1356_s14 = scalar_lea.vmem %s1094_s19, 16  ;;  %s1360_s1 = scalar_lea.vmem %s1094_s19, 32 }
 0x3a0   :  { %1334 = vtanh.f32 %v722_v11  ;;  %p1357_p0 = scmp.ne.s32.totalorder %s1094_s19, %s1356_s14  ;;  %p1361_p1 = scmp.lt.s32.totalorder %s1094_s19, %s1094_s19 }
 0x3a1   :  { %1336 = vtanh.f32 %v721_v12  ;;  %p1362_p2 = scmp.lt.s32.totalorder %s1360_s1, %s1356_s14 }
 0x3a3   :  { %p1363_p3 = por %p1362_p2, %p1361_p1 }
 0x3a5   :  { %p1364_p4 = pnand %p1363_p3, %p1357_p0 }
 0x3a6   :  { %v1331_v3 = vpop.eup %1330 }
 0x3a7   :  { %v1333_v13 = vpop.eup %1332  ;;  %v728_v16 = vadd.f32 1.0, %v1331_v3 }
 0x3a8   :  { %v727_v8 = vadd.f32 1.0, %v1333_v13  ;;  %v931_v13 = vpop.permute.xlu0 %930 }
 0x3a9   :  { %v732_v14 = vmul.f32 0.5, %v728_v16 }
 0x3aa   :  { %v1335_v15 = vpop.eup %1334  ;;  %v731_v17 = vmul.f32 0.5, %v727_v8 }
 0x3ab   :  { %v1337_v18 = vpop.eup %1336  ;;  %v736_v19 = vmul.f32 %v732_v14, %v706_v62  ;;  %v730_v20 = vadd.f32 1.0, %v1335_v15 }
 0x3ac   :  { %v735_v21 = vmul.f32 %v731_v17, %v701_v0  ;;  %v729_v22 = vadd.f32 1.0, %v1337_v18  ;;  %v1046_v18 = vpop.permute.xlu0 %1045 }
 0x3ad   :  { %v734_v23 = vmul.f32 0.5, %v730_v20 }
 0x3ae   :  { %v733_v24 = vmul.f32 0.5, %v729_v22  ;;  %v1260_v25 = vpack.c.bf16 %v736_v19, %v735_v21 }
 0x3af   :  { %v738_v26 = vmul.f32 %v734_v23, %v716_v7  ;;  %v926_v7 = vpop.permute.xlu1 %925 }
 0x3b0   :  { %v737_v27 = vmul.f32 %v733_v24, %v711_v10  ;;  %1261 = vmatprep.subr.bf16.mxu1 %v1260_v25 }
 0x3b1   :  { %1263 = vmatpush3.bf16.msra.mxu1 %v1260_v25 }
 0x3b2   :  { %v1264_v28 = vpack.c.bf16 %v738_v26, %v737_v27  ;;  %v1056_v27 = vpop.permute.xlu0 %1055 }
 0x3b3   :  { %v1041_v15 = vpop.permute.xlu1 %1040 }
 0x3b4   :  { %1265 = vmatprep.subr.bf16.mxu1 %v1264_v28 }
 0x3b5   :  { %1267 = vmatpush3.bf16.msra.mxu1 %v1264_v28 }
 0x3b7   :  { %v1051_v24 = vpop.permute.xlu1 %1050 }
 0x3b8   :  { %1217 = vmatmul.mubr.msk.f32.vlgmr.msra.gmra.mrb[4].mxu1 %vm265_vm0, %v741_v29 }
 0x3b9   :  { %1219 = vmatprep.mubr.msk.f32.mxu1 %vm265_vm0, %v742_v30 }
 0x3bb   :  { %v1075_v35 = vpop.permute.xlu1 %1074 }
 0x3bc   :  { %1220 = vmatmul.mubr.msk.f32.gmra.mrb[6].mxu1 %vm265_vm0, %v743_v31  ;;  %v1080_v37 = vrot.slane %v1075_v35, %v1553_v40 }
 0x3bd   :  { %1233 = vmatprep.mubr.msk.f32.mxu1 %vm265_vm0, %v907_v33 }
 0x48b   :  { %v1218_v43 = vpop.f32.mrb[4].mxu1 }
 0x48c   :  { %v860_v45 = vadd.f32 %v1218_v43, %v773_v39  ;;  %v854_v46 = vpop.f32.mrb[5].mxu1 }
 0x48d   :  { %v855_v47 = vadd.f32 %v854_v46, %v772_v41 }
 0x48e   :  { %v898_v49 = vadd.f32 %v885_v42, %v860_v45 }
 0x48f   :  { %v897_v51 = vadd.f32 %v880_v44, %v855_v47  ;;  %v1221_v52 = vpop.f32.mrb[6].mxu1 }
 0x490   :  { %1338 = vtanh.f32 %v898_v49  ;;  %v870_v53 = vadd.f32 %v1221_v52, %v775_v48  ;;  %v864_v54 = vpop.f32.mrb[7].mxu1 }
 0x491   :  { %1340 = vtanh.f32 %v897_v51  ;;  %v865_v56 = vadd.f32 %v864_v54, %v774_v50 }
 0x492   :  { %v900_v58 = vadd.f32 %v895_v55, %v870_v53 }
 0x493   :  { %v899_v59 = vadd.f32 %v890_v57, %v865_v56 }
 0x494   :  { %1342 = vtanh.f32 %v900_v58 }
 0x495   :  { %1344 = vtanh.f32 %v899_v59 }
 0x49a   :  { %v1339_v60 = vpop.eup %1338 }
 0x49b   :  { %v1341_v61 = vpop.eup %1340 }
 0x49c   :  { %v1268_v62 = vpack.c.bf16 %v1339_v60, %v1341_v61 }
 0x49e   :  { %v1343_v63 = vpop.eup %1342  ;;  %1269 = vmatprep.subr.bf16.mxu0 %v1268_v62  ;;  %1276 = vmatprep.subr.bf16.mxu1 %v1268_v62 }
 0x49f   :  { %v1345_v0 = vpop.eup %1344  ;;  %1271 = vmatpush3.bf16.msra.mxu0 %v1268_v62  ;;  %1278 = vmatpush3.bf16.msra.mxu1 %v1268_v62 }
 0x4a0   :  { %v1272_v1 = vpack.c.bf16 %v1343_v63, %v1345_v0 }
 0x4a2   :  { %1273 = vmatprep.subr.bf16.mxu0 %v1272_v1  ;;  %1277 = vmatprep.subr.bf16.mxu1 %v1272_v1 }
 0x4a3   :  { %1275 = vmatpush3.bf16.msra.mxu0 %v1272_v1  ;;  %1279 = vmatpush3.bf16.msra.mxu1 %v1272_v1 }
 0x4a6   :  { %1231 = vmatmul.mubr.msk.f32.vlgmr.msra.gmra.mrb[8].mxu0 %vm265_vm0, %v906_v2  ;;  %1234 = vmatmul.mubr.msk.f32.vlgmr.msra.gmra.mrb[8].mxu1 %vm265_vm0, %v908_v4 }
 0x579   :  { %v1232_v9 = vpop.f32.mrb[8].mxu0  ;;  %v1235_v10 = vpop.f32.mrb[8].mxu1 }
 0x57a   :  { %v1017_v11 = vadd.f32 %v1232_v9, %v921_v6  ;;  %v1011_v12 = vpop.f32.mrb[9].mxu0  ;;  %v1021_v3 = vpop.f32.mrb[9].mxu1  ;;  %v1027_v14 = vadd.f32 %v1235_v10, %v931_v13 }
 0x57b   :  { %v1012_v16 = vadd.f32 %v1011_v12, %v916_v5  ;;  %v1022_v8 = vadd.f32 %v1021_v3, %v926_v7 }
 0x57c   :  { %1346 = vtanh.f32 %v1017_v11 }
 0x57d   :  { %1348 = vtanh.f32 %v1012_v16 }
 0x57e   :  { %1350 = vtanh.f32 %v1022_v8 }
 0x57f   :  { %1352 = vtanh.f32 %v1027_v14 }
 0x586   :  { %v1347_v17 = vpop.eup %1346 }
 0x587   :  { %v1059_v19 = vmul.f32 %v1347_v17, %v1046_v18  ;;  %v1349_v20 = vpop.eup %1348 }
 0x588   :  { %v1351_v21 = vpop.eup %1350  ;;  %v1058_v22 = vmul.f32 %v1349_v20, %v1041_v15 }
 0x589   :  { %v1353_v23 = vpop.eup %1352  ;;  %v1060_v26 = vmul.f32 %v1351_v21, %v1051_v24 }
 0x58a   :  { %v1062_v25 = vadd.f32 %v1059_v19, %v1058_v22  ;;  %v1061_v28 = vmul.f32 %v1353_v23, %v1056_v27 }
 0x58c   :  { %v1063_v29 = vadd.f32 %v1062_v25, %v1060_v26 }
 0x58e   :  { %v1064_v30 = vadd.f32 %v1063_v29, %v1061_v28 }
 0x590   :  { %v1065_v31 = vrot.slane %v1064_v30, 4 }
 0x592   :  { %v1066_v32 = vadd.f32 %v1065_v31, %v1064_v30 }
 0x594   :  { %v1067_v33 = vrot.slane %v1066_v32, 2 }
 0x596   :  { %v1068_v34 = vadd.f32 %v1067_v33, %v1066_v32 }
 0x598   :  { %v1069_v36 = vrot.slane %v1068_v34, 1 }
 0x59a   :  { %v1070_v38 = vadd.f32 %v1069_v36, %v1068_v34 }
 0x59c   :  { %v1081_v39 = vadd.f32 %v1080_v37, %v1070_v38 }
 0x59e   :  { %v1082_v41 = vmul.f32 0.5, %v1081_v39 }
 0x5a0   :  { %1354 = vtanh.f32 %v1082_v41 }
 0x5aa   :  { %v1355_v42 = vpop.eup %1354 }
 0x5ab   :  { %v1084_v43 = vadd.f32 1.0, %v1355_v42 }
 0x5ad   :  { %v1085_v44 = vmul.f32 0.5, %v1084_v43 }
 0x5af   :  { %1086 = vst [vmem:[#allocation3] sm:$0x1] %v1085_v44 }
 0x5b0   :  { %1367 = shalt.err (!%p1364_p4)
}
 0x5b1   :  { %s1368_s15 = scalar_lea.hbm %s1749_s17, 16 }
 0x5b2   :  { %p1369_p5 = scmp.ne.s32.totalorder %s1749_s17, %s1368_s15  ;;  %p1372_p6 = scmp.lt.u32.totalorder %s1368_s15, %s1749_s17 }
 0x5b4   :  { %p1374_p7 = pnand %p1372_p6, %p1369_p5 }
 0x5b6   :  { %1377 = shalt.err (!%p1374_p7)
}
 0x5b7   :  { %1096 = dma.vmem_to_hbm [thread:$0]  %s1094_s19, 16, %s1749_s17, [#allocation4]  }
 0x5b8   :  { %1378 = dma.done.wait [#allocation4], 16  }
 0x5b9   :  { %1379 = vsyncadd [#allocation4], 4294967280 }
 0x5ba   :  { %1100 = vsyncpa [#allocation4], 1 }

</bundles_post_ra>
